<compile_context>
chip_gen: v7x
topology: tpu7x:2x2x1
jax: 0.10.0
libtpu: 0.0.40
codegen_flags: <defaults>
</compile_context>

<pallas_src>
import functools

import jax
import jax.numpy as jnp
from jax.experimental import pallas as pl
from jax.experimental.pallas import tpu as pltpu

LANE = 128          # output channels padded to this (lane-dense stores)
K_ALIGN = 128       # total GEMM K padded to this (MXU-friendly contraction)
NEG_SLOPE = 0.2


def _round_up(v, m):
    return (v + m - 1) // m * m


# ----------------------------------------------------------------------------
# Tile-size selection
# ----------------------------------------------------------------------------
def _pick_tm(m):
    """M tile for a plain GEMM: divisor of m, mult of 8, prefer >=2 blocks."""
    if m <= 512:
        if m >= 256 and m % 16 == 0:
            return m // 2                       # 2 blocks -> both TCs on v7x
        return m
    for tm in (512, 384, 256, 128, 64, 32, 16, 8):
        if m % tm == 0:
            return tm
    return m                                    # fallback: one full-M block


def _pick_tm_pool(m, wo):
    """M tile for a pool-fused GEMM: multiple of 2*wo, divisor of m."""
    base = 2 * wo
    assert m % base == 0, (m, wo)
    smax = m // base
    valid = []
    for s in range(1, smax + 1):
        if smax % s:
            continue
        tm = base * s
        if tm % 128 == 0 or tm == m:            # keep the pool matmul aligned
            valid.append(tm)
    pref = [t for t in valid if t <= 512 and m // t >= 2]
    if pref:
        return max(pref)
    pref = [t for t in valid if t <= 512]
    if pref:
        return max(pref)
    return min(valid)


def _pool_matrix(tm, wo, dtype=jnp.bfloat16):
    """(tm//4, tm) matrix P with P @ acc == 2x2 average pool of the tile."""
    c = jnp.arange(tm)
    dst = (c // (2 * wo)) * (wo // 2) + (c % wo) // 2
    p = (jnp.arange(tm // 4)[:, None] == dst[None, :]).astype(jnp.float32) * 0.25
    return p.astype(dtype)


# ----------------------------------------------------------------------------
# Pallas kernels
# ----------------------------------------------------------------------------
def _gemm_kernel(a_ref, b_ref, o_ref, *, apply_lrelu, scale):
    acc = jnp.dot(a_ref[...], b_ref[...], preferred_element_type=jnp.float32)
    if apply_lrelu:
        acc = jnp.where(acc >= 0.0, acc, NEG_SLOPE * acc)
    if scale != 1.0:
        acc = acc * scale
    o_ref[...] = acc.astype(o_ref.dtype)


def _gemm_pool_kernel(a_ref, b_ref, p_ref, o_ref, *, apply_lrelu, scale):
    acc = jnp.dot(a_ref[...], b_ref[...], preferred_element_type=jnp.float32)
    if apply_lrelu:
        acc = jnp.where(acc >= 0.0, acc, NEG_SLOPE * acc)
    # Fused 2x2 average pool as a small resident matmul (lowering-safe).
    pooled = jnp.dot(p_ref[...], acc.astype(jnp.bfloat16),
                     preferred_element_type=jnp.float32)
    if scale != 1.0:
        pooled = pooled * scale
    o_ref[...] = pooled.astype(o_ref.dtype)


def _gemm(a, b, *, apply_lrelu, scale=1.0, pool_wo=None, out_dtype=jnp.bfloat16):
    """a: (M, K) bf16; b: (K, N) bf16, N % 128 == 0.  Weight stays VMEM-resident."""
    m, kdim = a.shape
    kdim2, nn = b.shape
    assert kdim == kdim2 and nn % LANE == 0, (a.shape, b.shape)

    if nn <= 512:
        tn = nn
    else:
        tn = 256 if nn % 256 == 0 else 128

    if pool_wo is None:
        tm = _pick_tm(m)
        assert m % tm == 0
        out_m, out_tm = m, tm
        kernel = functools.partial(_gemm_kernel,
                                   apply_lrelu=apply_lrelu, scale=scale)
        extra_in = ()
        extra_specs = ()
        p_bytes = 0
    else:
        tm = _pick_tm_pool(m, pool_wo)
        assert m % tm == 0 and tm % (2 * pool_wo) == 0
        out_m, out_tm = m // 4, tm // 4
        pmat = _pool_matrix(tm, pool_wo)
        kernel = functools.partial(_gemm_pool_kernel,
                                   apply_lrelu=apply_lrelu, scale=scale)
        extra_in = (pmat,)
        extra_specs = (pl.BlockSpec((tm // 4, tm), lambda j, i: (0, 0)),)
        p_bytes = 2 * (tm // 4) * tm * 2

    grid = (nn // tn, m // tm)                  # M innermost -> B fetched once/j

    # VMEM footprint (double-buffered in/out tiles + f32 temporaries) + headroom.
    vmem = (2 * tm * kdim * 2 + 2 * kdim * tn * 2 + 2 * out_tm * tn * 2
            + p_bytes + tm * tn * 4 + out_tm * tn * 4)
    vmem_limit = int(min(64 * 1024 * 1024,
                         max(vmem + 8 * 1024 * 1024, 16 * 1024 * 1024)))

    return pl.pallas_call(
        kernel,
        out_shape=jax.ShapeDtypeStruct((out_m, nn), out_dtype),
        grid_spec=pltpu.PrefetchScalarGridSpec(
            num_scalar_prefetch=0,
            grid=grid,
            in_specs=[pl.BlockSpec((tm, kdim), lambda j, i: (i, 0)),
                      pl.BlockSpec((kdim, tn), lambda j, i: (0, j)),
                      *extra_specs],
            out_specs=pl.BlockSpec((out_tm, tn), lambda j, i: (i, j))),
        compiler_params=pltpu.CompilerParams(
            dimension_semantics=("parallel", "parallel"),
            vmem_limit_bytes=vmem_limit),
    )(a, b, *extra_in)


def _batch_std_kernel(x_ref, o_ref, *, inv_count, inv_nm1):
    x = x_ref[...].astype(jnp.float32)                   # (batch, H*W*Cpad)
    mean = jnp.mean(x, axis=0, keepdims=True)
    # unbiased std over the batch dim, exactly like torch.std(x, dim=0)
    var = jnp.sum((x - mean) ** 2, axis=0, keepdims=True) * inv_nm1
    o_ref[0, 0] = jnp.sum(jnp.sqrt(var)) * inv_count


def _batch_std_pallas(x, real_c):
    """Mean over (real C, H, W) of unbiased batch std.  Single-shot kernel."""
    n, h, w, cpad = x.shape
    assert n >= 2, "torch.std(dim=0) is unbiased; needs batch >= 2"
    xf = x.reshape(n, h * w * cpad)           # long axis last -> lane-dense
    # padded channel lanes are exact zeros -> their std is 0 and does not
    # perturb the 1/(H*W*real_C) normalization.
    return pl.pallas_call(
        functools.partial(_batch_std_kernel,
                          inv_count=1.0 / float(h * w * real_c),
                          inv_nm1=1.0 / float(n - 1)),
        out_shape=jax.ShapeDtypeStruct((1, 1), jnp.float32),
        in_specs=[pl.BlockSpec(memory_space=pltpu.MemorySpace.VMEM)],
        out_specs=pl.BlockSpec(memory_space=pltpu.MemorySpace.SMEM),
    )(xf)


def _init_head_kernel(p2_ref, w2_ref, w3_ref, o_ref):
    """Fused init head: 4x4 valid conv (as FC) + LeakyReLU + final 1x1 conv."""
    h = jnp.dot(p2_ref[...], w2_ref[...], preferred_element_type=jnp.float32)
    h = jnp.where(h >= 0.0, h, NEG_SLOPE * h)
    o_ref[...] = jnp.dot(h.astype(jnp.bfloat16), w3_ref[...],
                         preferred_element_type=jnp.float32)


def _init_head_pallas(p2, w2, w3):
    nb = p2.shape[0]
    return pl.pallas_call(
        _init_head_kernel,
        out_shape=jax.ShapeDtypeStruct((nb, w3.shape[1]), jnp.float32),
        in_specs=[pl.BlockSpec(memory_space=pltpu.MemorySpace.VMEM)] * 3,
        out_specs=pl.BlockSpec(memory_space=pltpu.MemorySpace.VMEM),
    )(p2, w2, w3)


# ----------------------------------------------------------------------------
# Conv = im2col (dense K, bf16 layout glue) + resident-weight Pallas GEMM
# ----------------------------------------------------------------------------
def _im2col(x, k, pad, cin, kdim):
    """Dense patches (M, kdim) where kdim = round_up(k*k*cin, 128)."""
    n = x.shape[0]
    if x.shape[-1] > cin:
        x = x[..., :cin]                        # drop the zero-padded lanes
    if pad:
        x = jnp.pad(x, ((0, 0), (pad, pad), (pad, pad), (0, 0)))
    ho = x.shape[1] - k + 1
    wo = x.shape[2] - k + 1
    if k == 1:
        cols = [x]
    else:
        cols = [x[:, i:i + ho, j:j + wo, :] for i in range(k) for j in range(k)]
    fill = kdim - k * k * cin
    if fill:
        cols.append(jnp.zeros((n, ho, wo, fill), x.dtype))
    patches = cols[0] if len(cols) == 1 else jnp.concatenate(cols, axis=-1)
    return patches.reshape(n * ho * wo, kdim), ho, wo


def conv2d_sn(x, p, *, apply_lrelu, pool=False, scale=1.0):
    """x: (N,H,W,C>=cin) bf16; p['w']: (kdim, cout_pad) bf16.  Optional fused
    2x2 average pool and constant output scale in the GEMM epilogue."""
    assert x.shape[-1] >= p["cin"], (x.shape, p["cin"])
    n = x.shape[0]
    patches, ho, wo = _im2col(x, p["k"], p["pad"], p["cin"], p["kdim"])
    assert patches.shape[1] == p["w"].shape[0]
    out = _gemm(patches, p["w"], apply_lrelu=apply_lrelu, scale=scale,
                pool_wo=(wo if pool else None))
    if pool:
        return out.reshape(n, ho // 2, wo // 2, p["cout_pad"])
    return out.reshape(n, ho, wo, p["cout_pad"])


# ----------------------------------------------------------------------------
# Parameter construction (deterministic, synthetic)
# ----------------------------------------------------------------------------
def _spectral_normalize(w, key, n_iter=1, eps=1e-12):
    cout = w.shape[0]
    w_mat = w.reshape(cout, -1)
    u = jax.random.normal(key, (cout,), jnp.float32)
    u = u / (jnp.linalg.norm(u) + eps)
    v = None
    for _ in range(n_iter):
        v = w_mat.T @ u
        v = v / (jnp.linalg.norm(v) + eps)
        u = w_mat @ v
        u = u / (jnp.linalg.norm(u) + eps)
    sigma = u @ (w_mat @ v)
    return w / sigma


def _make_sn_conv(key, cin, cout, k, pad, *, k_pad_to=None, dtype=jnp.bfloat16):
    kw_, ku = jax.random.split(key)
    w = jax.random.normal(kw_, (cout, cin, k, k), jnp.float32)   # nn.init.normal_
    w = _spectral_normalize(w, ku)
    kk_real = k * k * cin
    kk = _round_up(kk_real, K_ALIGN) if k_pad_to is None else k_pad_to
    cout_p = _round_up(cout, LANE)
    # (Cout,Cin,k,k) -> (k,k,Cin,Cout) -> dense (k*k*Cin, Cout), pad K & N only.
    w_hwio = jnp.transpose(w, (2, 3, 1, 0)).reshape(kk_real, cout)
    w_full = jnp.zeros((kk, cout_p), jnp.float32)
    w_full = w_full.at[:kk_real, :cout].set(w_hwio)
    return {"w": w_full.astype(dtype), "k": k, "pad": pad,
            "cin": cin, "cout": cout, "cout_pad": cout_p, "kdim": kk}


def init_params(key, img_channels, max_channels, factors):
    L = len(factors)
    keys = iter(jax.random.split(key, 4 * L + 16))

    # rgbBlocks[0]=initFromRGB (-> maxC); rgbBlocks[j>=1] -> int(maxC*factors[j-1])
    rgb_out = [max_channels] + [int(max_channels * f) for f in factors]
    rgb = [_make_sn_conv(next(keys), img_channels, c, 1, 0) for c in rgb_out]

    # proBlocks[0]: int(maxC*f[0])->maxC; proBlocks[j>=1]: int(maxC*f[j])->int(maxC*f[j-1])
    pro = []
    for j in range(L):
        cin = int(max_channels * factors[j])
        cout = max_channels if j == 0 else int(max_channels * factors[j - 1])
        pro.append({"c1": _make_sn_conv(next(keys), cin, cout, 3, 1),
                    "c2": _make_sn_conv(next(keys), cout, cout, 3, 1)})

    init_block = {
        "c1": _make_sn_conv(next(keys), max_channels + 1, max_channels, 3, 1),
        "c2": _make_sn_conv(next(keys), max_channels, max_channels, 4, 0),
        # c3 K is padded to c2's padded output width so the fused head needs
        # no in-kernel channel slice; bf16 so both head matmuls are single-pass.
        "c3": _make_sn_conv(next(keys), max_channels, 1, 1, 0,
                            k_pad_to=_round_up(max_channels, LANE)),
    }
    return {"rgb": rgb, "pro": pro, "init": init_block,
            "max_channels": max_channels}


# ----------------------------------------------------------------------------
# Forward pass (mirrors Discriminator.forward)
# ----------------------------------------------------------------------------
def _pro_block(p, x, scale=1.0):
    h = conv2d_sn(x, p["c1"], apply_lrelu=True)
    # second conv: LeakyReLU + 2x2 avg pool (+ optional fade-in alpha) fused
    return conv2d_sn(h, p["c2"], apply_lrelu=True, pool=True, scale=scale)


def _init_block(params, x):
    n, h, w, cs = x.shape
    maxc = params["max_channels"]
    if cs < maxc + 1:                      # free channel lane for the std feature
        cpad = _round_up(maxc + 1, LANE)
        x = jnp.pad(x, ((0, 0), (0, 0), (0, 0), (0, cpad - cs)))
    std = _batch_std_pallas(x, maxc)                     # (1,1) f32 via Pallas
    # BatchStd concat: padded channel layout has an empty lane at index maxc
    x = x.at[:, :, :, maxc].set(std[0, 0].astype(x.dtype))
    y = conv2d_sn(x, params["init"]["c1"], apply_lrelu=True)   # (N,4,4,Cpad)
    c2 = params["init"]["c2"]
    # im2col of the 4x4 valid conv == flatten the real channels of the 4x4 map
    p2 = y[..., :c2["cin"]].reshape(n, h * w * c2["cin"])
    head = _init_head_pallas(p2, c2["w"], params["init"]["c3"]["w"])
    return head[:, :1]                                   # Flatten -> (N, 1)


def discriminator_forward(params, x_nchw, n_block, alpha=1.0):
    alpha = float(alpha)
    x = jnp.transpose(x_nchw.astype(jnp.float32), (0, 2, 3, 1)).astype(jnp.bfloat16)
    if n_block == 1:
        h = conv2d_sn(x, params["rgb"][0], apply_lrelu=False)
        return _init_block(params, h)
    last = x
    h = None
    for i in range(n_block - 2, -1, -1):
        if i == n_block - 2:
            t = conv2d_sn(last, params["rgb"][i + 1], apply_lrelu=False)
            out = _pro_block(params["pro"][i], t, scale=alpha)
            down = conv2d_sn(last, params["rgb"][i], apply_lrelu=False,
                             pool=True, scale=1.0 - alpha)
            h = out + down                   # alpha folded into the epilogues
        else:
            h = _pro_block(params["pro"][i], last)
        last = h
    return _init_block(params, h)


# ----------------------------------------------------------------------------
if __name__ == "__main__":
    key = jax.random.PRNGKey(0)
    pkey, xkey = jax.random.split(key)

    img_channels, max_channels = 3, 16
    factors = [1.0, 0.5, 0.25]
    params = init_params(pkey, img_channels, max_channels, factors)

    n_block, alpha = 3, 0.7
    spatial = 4 * 2 ** (n_block - 1)                     # 16
    x = jax.random.normal(xkey, (2, img_channels, spatial, spatial), jnp.float32)

    out = discriminator_forward(params, x, n_block, alpha)
    out = jax.block_until_ready(out)
    assert out.shape == (2, 1), out.shape
    assert bool(jnp.all(jnp.isfinite(out)))
    print("KERNEL_OK")
</pallas_src>

<mosaic_0001>
module attributes {stable_mosaic.version = 11 : i64} {
  func.func @_gemm_kernel(%arg0: i32, %arg1: i32, %arg2: memref<256x128xbf16, #tpu.memory_space<vmem>>, %arg3: memref<128x128xbf16, #tpu.memory_space<vmem>>, %arg4: memref<256x128xbf16, #tpu.memory_space<vmem>>) attributes {dimension_semantics = [#tpu.dimension_semantics<parallel>, #tpu.dimension_semantics<parallel>], iteration_bounds = array<i64: 1, 2>, scalar_prefetch = 0 : i64, scratch_operands = 0 : i64, tpu.core_type = #tpu.core_type<tc>, window_params = [{transform_indices = @transform_0, window_bounds = array<i64: 256, 128>}, {transform_indices = @transform_1, window_bounds = array<i64: 128, 128>}, {transform_indices = @transform_2, window_bounds = array<i64: 256, 128>}]} {
    %c0 = arith.constant 0 : index
    %c0_0 = arith.constant 0 : index
    %0 = vector.load %arg2[%c0, %c0_0] : memref<256x128xbf16, #tpu.memory_space<vmem>>, vector<256x128xbf16>
    %c0_1 = arith.constant 0 : index
    %c0_2 = arith.constant 0 : index
    %1 = vector.load %arg3[%c0_1, %c0_2] : memref<128x128xbf16, #tpu.memory_space<vmem>>, vector<128x128xbf16>
    %cst = arith.constant dense<0.000000e+00> : vector<256x128xf32>
    %2 = tpu.matmul %0, %1, %cst {dimension_numbers = #tpu.dot_dimension_numbers<[1], [0], [0], [1], [0, 0, 1, 1], [], []>} : vector<256x128xbf16>, vector<128x128xbf16>, vector<256x128xf32> -> vector<256x128xf32>
    %3 = arith.truncf %2 : vector<256x128xf32> to vector<256x128xbf16>
    %c0_3 = arith.constant 0 : index
    %c0_4 = arith.constant 0 : index
    %4 = vector.load %arg4[%c0_3, %c0_4] : memref<256x128xbf16, #tpu.memory_space<vmem>>, vector<256x128xbf16>
    tpu.vector_store %arg4[%c0_3, %c0_4], %3 {strides = array<i32>} : memref<256x128xbf16, #tpu.memory_space<vmem>>, vector<256x128xbf16>,
    return
  }
  func.func @transform_0(%arg0: i32, %arg1: i32) -> (i32, i32) {
    %c0_i32 = arith.constant 0 : i32
    %c0_i32_0 = arith.constant 0 : i32
    return %arg1, %c0_i32 : i32, i32
  }
  func.func @transform_1(%arg0: i32, %arg1: i32) -> (i32, i32) {
    %c0_i32 = arith.constant 0 : i32
    %c0_i32_0 = arith.constant 0 : i32
    return %c0_i32, %arg0 : i32, i32
  }
  func.func @transform_2(%arg0: i32, %arg1: i32) -> (i32, i32) {
    %c0_i32 = arith.constant 0 : i32
    return %arg1, %arg0 : i32, i32
  }
}

</mosaic_0001>

<bundles_post_ra>
// kernel: tpu_custom_call.1
= control target key start
LH: loop header
LB: loop body
LE: loop exit
PB: predicated region body
PF: predicated region fallthrough
CT: control target
= control target key end

     0   :  { %7 = vsyncpa [#allocation3], 0  ;;  %s1649_s0 = inlined_call_operand.hbm [shape: bf16[512,128], index: 0, kind: input, shape index: {}]   ;;  %s1650_s1 = inlined_call_operand.hbm [shape: bf16[128,128], index: 1, kind: input, shape index: {}]   ;;  %s1651_s2 = inlined_call_operand.hbm [shape: bf16[512,128], index: 2, kind: output, shape index: {}]  }
   0x1   :  { %9 = vsyncpa [#allocation3 + $0x1], 0 }
   0x2   :  { %10 = vsyncpa [#allocation6], 0 }
   0x3   :  { %11 = vsyncpa [#allocation4], 0 }
   0x4   :  { %13 = vsyncpa [#allocation4 + $0x1], 0  ;;  %s1383_s9 = smov 0   ;;  %s1385_s10 = smov 0  }
   0x5   :  { %s1387_s11 = smov 0   ;;  %s1389_s12 = smov 0  }
   0x6   :  { %s1391_s13 = smov 0   ;;  %s1393_s14 = smov 0  }
   0x7 LB: > { %s824_s15 = sadd.s32 4294967295, %s1359_s14   ;;  %s825_s16 = sadd.s32 4294967294, %s1359_s14   ;;  %s1359_s14 = sphi %s1393_s14, %s19_s14   ;;  %s1355_s13 = sphi %s1391_s13, %s1675_s13   ;;  %s1351_s12 = sphi %s1389_s12, %s1674_s12   ;;  %s1347_s11 = sphi %s1387_s11, %s1673_s11   ;;  %s1343_s10 = sphi %s1385_s10, %s1672_s10   ;;  %s1339_s9 = sphi %s1383_s9, %s1671_s9  }
   0x8   : > { %p51_p0 = scmp.ne.s32.totalorder %s1343_s10, %s1339_s9  ;;  %p1417_p1 = scmp.eq.s32.totalorder %s824_s15, 0 }
   0x9   : > { %p1421_p2 = scmp.eq.s32.totalorder %s824_s15, 1  ;;  %p109_p3 = scmp.eq.s32.totalorder %s825_s16, 1 }
   0xa   : > { %s1656_s17 = scalar_select %p1417_p1, 1, 0 }
   0xb   : > { %s1657_s18 = scalar_select %p1421_p2, 1, 0 }
   0xc   : > { %p1427_p4 = por %p1417_p1, %p51_p0  ;;  %p826_p5 = scmp.ge.s32.totalorder %s1359_s14, 1 }
   0xd   : > { %p1432_p6 = por %p109_p3, %p51_p0  ;;  %p116_p7 = scmp.lt.s32.totalorder %s1359_s14, 3 }
   0xe   : > { %s1658_s19 = scalar_select %p1427_p4, 1, 0 }
   0xf   : > { %s1659_s20 = scalar_select %p1432_p6, 1, 0 }
  0x10   : > { %p1437_p8 = pnand %p826_p5, %p116_p7  ;;  %s1361_s22 = smov [#allocation5]  }
  0x11   : > { %s130_s23 = sshll.u32 %s1361_s22, 4  ;;  %s28_s25 = sadd.s32 1, %s1355_s13  ;;  %s131_s23 = int_to_ptr.vmem [resolvable:$true] %s130_s23 }
  0x12   : > { %s1660_s21 = scalar_select %p1437_p8, 1, 0 }
  0x13   : > { %p1122_p9 = pneg %p1437_p8  ;;  %s1215_s28 = scalar_lea.hbm %s1650_s1, 1024 }
  0x14   : > { %p1216_p12 = scmp.ne.s32.totalorder %s1650_s1, %s1215_s28  ;;  %p1222_p5 = scmp.lt.u32.totalorder %s1215_s28, %s1650_s1 }
  0x15   : > { %p1446_p11 = pnand %p1122_p9, %p1417_p1 }
  0x17   : > { %p1217_p13 = pneg %p1446_p11 }
  0x19   : > { %p1218_p0 = pnand %p1217_p13, %p1216_p12 }
  0x1b   : > { %p1219_p3 = pneg %p1218_p0 }
  0x1d   : > { %p1224_p7 = pnand %p1222_p5, %p1219_p3 }
  0x1f   : > { %1227 = shalt.err (!%p1224_p7)
}
  0x20   : > { %s1228_s5 = scalar_lea.vmem %s131_s23, 1024  ;;  %p1236_p1 = scmp.lt.s32.totalorder %s131_s23, %s131_s23 }
  0x21   : > { %p1229_p9 = scmp.ne.s32.totalorder %s131_s23, %s1228_s5  ;;  %p1237_p4 = scmp.lt.s32.totalorder %s1228_s5, %s1228_s5 }
  0x23   : > { %p1231_p10 = pnand %p1229_p9, %p1217_p13  ;;  %p1238_p8 = por %p1237_p4, %p1236_p1 }
  0x25   : > { %p1232_p6 = pneg %p1231_p10 }
  0x27   : > { %p1239_p2 = pnand %p1238_p8, %p1232_p6 }
  0x29   : > { %1242 = shalt.err (!%p1239_p2)
}
  0x2a   : > { %s1362_s6 = smov 64   ;;  %s1363_s7 = smov 4  }
  0x2b   : > { %1125 = dma.hbm_to_vmem [thread:$0]  (!%p1446_p11), %s1650_s1, 1024, %s131_s23, [#allocation6], %s1362_s6, %s1362_s6, %s1363_s7  }
  0x2c   : > { %p29_p1 = scmp.ge.s32.totalorder %s28_s25, 2  ;;  %s38_s16 = sadd.s32 1, %s1347_s11 }
  0x2d   : > { %p45_p2 = scmp.ne.s32.totalorder %s1347_s11, %s1343_s10  ;;  %p46_p4 = scmp.eq.s32.totalorder %s1359_s14, 0 }
  0x2e   : > { %s1677_s25 = smov (%p29_p1, %s28_s25), 0  ;;  %p1663_p8 = scmp.ne.s32.totalorder %s1657_s18, 0 }
  0x2f   : > { %p1476_p6 = por %p46_p4, %p45_p2  ;;  %s35_s26 = ssub.s32 %s1355_s13, %s1677_s25 }
  0x30   : > { %p1482_p10 = por %p1663_p8, %p45_p2  ;;  %p1135_p12 = scmp.lt.s32.totalorder %s1359_s14, 2 }
  0x31   : > { %p36_p11 = scmp.eq.s32.totalorder %s35_s26, 0  ;;  %s144_s23 = sand.u32 1, %s1347_s11  }
  0x32   : > { %s829_s27 = sshll.u32 %s144_s23, 7  ;;  %s897_s29 = sshll.u32 %s1355_s13, 11 }
  0x33   : > { %s1491_s28 = scalar_select %p36_p11, %s1347_s11, %s38_s16  }
  0x34   : > { %s1497_s4 = scalar_lea.hbm %s1649_s0, %s897_s29  ;;  %s148_s18 = scalar_lea.vmem [#allocation2], %s829_s27 }
  0x35   : > { %s155_s5 = sshll.u32 %s148_s18, 4  ;;  %p1503_p13 = pnand %p1135_p12, %p1476_p6  ;;  %s1499_s5 = int_to_ptr.vmem [resolvable:$true] %s155_s5 }
  0x36   : > { %s1507_s15 = scalar_lea.sflag [#allocation3], %s144_s23  ;;  %s1243_s16 = scalar_lea.hbm %s1497_s4, 2048 }
  0x37   : > { %p1244_p0 = scmp.ne.s32.totalorder %s1497_s4, %s1243_s16  ;;  %p1245_p3 = pneg %p1503_p13 }
  0x38   : > { %s1248_s22 = scalar_lea.hbm %s1649_s0, 4096  ;;  %p1249_p9 = scmp.lt.u32.totalorder %s1497_s4, %s1649_s0 }
  0x39   : > { %p1246_p5 = pnand %p1245_p3, %p1244_p0  ;;  %p1250_p1 = scmp.lt.u32.totalorder %s1248_s22, %s1243_s16 }
  0x3a   : > { %p1252_p4 = scmp.lt.u32.totalorder %s1243_s16, %s1497_s4 }
  0x3b   : > { %p1247_p7 = pneg %p1246_p5  ;;  %p1251_p2 = por %p1250_p1, %p1249_p9 }
  0x3d   : > { %p1253_p6 = por %p1252_p4, %p1251_p2 }
  0x3f   : > { %p1254_p8 = pnand %p1253_p6, %p1247_p7 }
  0x41   : > { %1257 = shalt.err (!%p1254_p8)
}
  0x42   : > { %s1258_s23 = scalar_lea.vmem %s1499_s5, 2048  ;;  %s1364_s3 = smov [#allocation2]  }
  0x43   : > { %p1259_p12 = scmp.ne.s32.totalorder %s1499_s5, %s1258_s23  ;;  %s1263_s18 = sshll.u32 %s1364_s3, 4  ;;  %s1264_s18 = int_to_ptr.vmem [resolvable:$false] %s1263_s18 }
  0x44   : > { %s1265_s26 = scalar_lea.vmem %s1264_s18, 4096  ;;  %p1266_p5 = scmp.lt.s32.totalorder %s1499_s5, %s1264_s18 }
  0x45   : > { %p1261_p11 = pnand %p1259_p12, %p1245_p3  ;;  %p1267_p9 = scmp.lt.s32.totalorder %s1265_s26, %s1258_s23 }
  0x47   : > { %p1262_p0 = pneg %p1261_p11  ;;  %p1268_p1 = por %p1267_p9, %p1266_p5 }
  0x49   : > { %p1269_p2 = pnand %p1268_p1, %p1262_p0 }
  0x4b   : > { %1272 = shalt.err (!%p1269_p2)
}
  0x4c   : > { %1129 = dma.hbm_to_vmem [thread:$0]  (!%p1503_p13), %s1497_s4, 2048, %s1499_s5, %s1507_s15, %s1362_s6, %s1362_s6, %s1363_s7  }
  0x4d   : > { %p1666_p3 = scmp.ne.s32.totalorder %s1660_s21, 0 }
  0x4e   : > { %s1541_s16 = sand.u32 (!%p1666_p3), 1, %s1343_s10   ;;  %p1667_p7 = scmp.ne.s32.totalorder (!%p1666_p3), %s1658_s19, 0 }
  0x4f   : > { %167 = sbr.rel (%p1666_p3) target bundleno = 379 (0x17b), region = 28  ;;  %s833_s27 = sshll.u32 (!%p1666_p3), %s1541_s16, 7 }
  0x50   : > { %s170_s22 = scalar_lea.sflag (!%p1666_p3), [#allocation3], %s1541_s16  ;;  %s1547_s8 = scalar_lea.vmem (!%p1666_p3), [#allocation2], %s833_s27 }
  0x56   : > { %1326 = dma.done.wait (%p1667_p7), %s170_s22, 2048  }
  0x57   : > { %1328 = vsyncadd (%p1667_p7), %s170_s22, 4294965248  ;;  %p1668_p13 = scmp.ne.s32.totalorder %s1656_s17, 0 }
  0x59   : > { %1330 = dma.done.wait (%p1668_p13), [#allocation6], 1024  }
  0x5a   : > { %1332 = vsyncadd (%p1668_p13), [#allocation6], 4294966272  ;;  %v1191_v0 = vld [vmem:[#allocation5] sm:$0xff]   ;;  %v1192_v1 = vld [vmem:[#allocation5 + $0x8] sm:$0xff]   ;;  %s1575_s17 = scalar_lea.vmem [#allocation7], %s833_s27  ;;  %s930_s19 = sshll.u32 %s1351_s12, 11 }
  0x5b   : > { %1050 = vmatprep.subr.bf16.mxu0 %v1191_v0  ;;  %1098 = vmatprep.subr.bf16.mxu1 %v1191_v0  ;;  %v1193_v2 = vld [vmem:[#allocation5 + $0x10] sm:$0xff]   ;;  %v1194_v3 = vld [vmem:[#allocation5 + $0x18] sm:$0xff]   ;;  %v1199_v4 = vld [vmem:[%s1547_s8] sm:$0xff]   ;;  %s729_s21 = sshll.u32 %s1575_s17, 4  ;;  %s1594_s4 = scalar_lea.hbm %s1651_s2, %s930_s19  ;;  %s1596_s21 = int_to_ptr.vmem [resolvable:$true] %s729_s21 }
  0x5c   : > { %1051 = vmatpush3.bf16.msra.mxu0 %v1191_v0  ;;  %1106 = vmatpush3.bf16.msra.mxu1 %v1191_v0  ;;  %v1200_v5 = vld [vmem:[%s1547_s8 + $0x40] sm:$0xff]   ;;  %v1196_v7 = vld [vmem:[#allocation5 + $0x28] sm:$0xff]   ;;  %v1197_v8 = vld [vmem:[#allocation5 + $0x30] sm:$0xff]   ;;  %s715_s12 = scalar_lea.sflag [#allocation4], %s1541_s16  ;;  %s1273_s5 = scalar_lea.vmem %s1596_s21, 2048 }
  0x5d   : > { %1052 = vmatprep.subr.bf16.mxu0 %v1192_v1  ;;  %1099 = vmatprep.subr.bf16.mxu1 %v1192_v1  ;;  %v1195_v6 = vld [vmem:[#allocation5 + $0x20] sm:$0xff]   ;;  %v1198_v9 = vld [vmem:[#allocation5 + $0x38] sm:$0xff]   ;;  %v1201_v10 = vld [vmem:[%s1547_s8 + $0x8] sm:$0xff]   ;;  %p1274_p4 = scmp.ne.s32.totalorder %s1596_s21, %s1273_s5  ;;  %s1365_s15 = smov [#allocation7]  }
  0x5e   : > { %1066 = vmatprep.mubr.bf16.mxu0 %v1199_v4  ;;  %1082 = vmatprep.mubr.bf16.mxu1 %v1200_v5  ;;  %v1202_v11 = vld [vmem:[%s1547_s8 + $0x48] sm:$0xff]   ;;  %v1203_v12 = vld [vmem:[%s1547_s8 + $0x10] sm:$0xff]   ;;  %v1205_v14 = vld [vmem:[%s1547_s8 + $0x18] sm:$0xff]   ;;  %s1277_s29 = sshll.u32 %s1365_s15, 4  ;;  %s1278_s29 = int_to_ptr.vmem [resolvable:$false] %s1277_s29 }
  0x5f   : > { %v1204_v13 = vld [vmem:[%s1547_s8 + $0x50] sm:$0xff]   ;;  %v1206_v15 = vld [vmem:[%s1547_s8 + $0x58] sm:$0xff]   ;;  %v1207_v16 = vld [vmem:[%s1547_s8 + $0x20] sm:$0xff]   ;;  %p1275_p6 = pnand %p1274_p4, %p1482_p10  ;;  %s1279_s30 = scalar_lea.vmem %s1278_s29, 4096 }
  0x60   : > { %1053 = vmatpush3.bf16.msra.mxu0 %v1192_v1  ;;  %1107 = vmatpush3.bf16.msra.mxu1 %v1192_v1  ;;  %v1208_v17 = vld [vmem:[%s1547_s8 + $0x60] sm:$0xff]   ;;  %v1209_v18 = vld [vmem:[%s1547_s8 + $0x28] sm:$0xff]   ;;  %v1211_v20 = vld [vmem:[%s1547_s8 + $0x30] sm:$0xff]   ;;  %p1280_p12 = scmp.lt.s32.totalorder %s1596_s21, %s1278_s29  ;;  %p1281_p11 = scmp.lt.s32.totalorder %s1279_s30, %s1273_s5 }
  0x61   : > { %1054 = vmatprep.subr.bf16.mxu0 %v1193_v2  ;;  %1100 = vmatprep.subr.bf16.mxu1 %v1193_v2  ;;  %v1210_v19 = vld [vmem:[%s1547_s8 + $0x68] sm:$0xff]   ;;  %v1212_v21 = vld [vmem:[%s1547_s8 + $0x70] sm:$0xff]   ;;  %v1213_v22 = vld [vmem:[%s1547_s8 + $0x38] sm:$0xff]   ;;  %p1276_p8 = pneg %p1275_p6 }
  0x62   : > { %v1214_v23 = vld [vmem:[%s1547_s8 + $0x78] sm:$0xff]   ;;  %p1282_p0 = por %p1281_p11, %p1280_p12 }
  0x64   : > { %1055 = vmatpush3.bf16.msra.mxu0 %v1193_v2  ;;  %1108 = vmatpush3.bf16.msra.mxu1 %v1193_v2  ;;  %p1283_p5 = pnand %p1282_p0, %p1276_p8 }
  0x65   : > { %1056 = vmatprep.subr.bf16.mxu0 %v1194_v3  ;;  %1101 = vmatprep.subr.bf16.mxu1 %v1194_v3 }
  0x68   : > { %1057 = vmatpush3.bf16.msra.mxu0 %v1194_v3  ;;  %1109 = vmatpush3.bf16.msra.mxu1 %v1194_v3 }
  0x69   : > { %1058 = vmatprep.subr.bf16.mxu0 %v1195_v6  ;;  %1102 = vmatprep.subr.bf16.mxu1 %v1195_v6 }
  0x6c   : > { %1059 = vmatpush3.bf16.msra.mxu0 %v1195_v6  ;;  %1110 = vmatpush3.bf16.msra.mxu1 %v1195_v6 }
  0x6d   : > { %1060 = vmatprep.subr.bf16.mxu0 %v1196_v7  ;;  %1103 = vmatprep.subr.bf16.mxu1 %v1196_v7 }
  0x70   : > { %1061 = vmatpush3.bf16.msra.mxu0 %v1196_v7  ;;  %1111 = vmatpush3.bf16.msra.mxu1 %v1196_v7 }
  0x71   : > { %1062 = vmatprep.subr.bf16.mxu0 %v1197_v8  ;;  %1104 = vmatprep.subr.bf16.mxu1 %v1197_v8 }
  0x74   : > { %1063 = vmatpush3.bf16.msra.mxu0 %v1197_v8  ;;  %1112 = vmatpush3.bf16.msra.mxu1 %v1197_v8 }
  0x75   : > { %1064 = vmatprep.subr.bf16.mxu0 %v1198_v9  ;;  %1105 = vmatprep.subr.bf16.mxu1 %v1198_v9 }
  0x78   : > { %1065 = vmatpush3.bf16.msra.mxu0 %v1198_v9  ;;  %1113 = vmatpush3.bf16.msra.mxu1 %v1198_v9 }
  0x7b   : > { %1067 = vmatmul.mubr.bf16.vlgmr.msra.gmra.mrb[0].mxu0 %v1201_v10  ;;  %1083 = vmatmul.mubr.bf16.vlgmr.msra.gmra.mrb[0].mxu1 %v1202_v11 }
  0x7c   : > { %1070 = vmatprep.mubr.bf16.mxu0 %v1203_v12  ;;  %1086 = vmatprep.mubr.bf16.mxu1 %v1204_v13 }
  0x83   : > { %1071 = vmatmul.mubr.bf16.gmra.mrb[4].mxu0 %v1205_v14  ;;  %1087 = vmatmul.mubr.bf16.gmra.mrb[4].mxu1 %v1206_v15 }
  0x84   : > { %1074 = vmatprep.mubr.bf16.mxu0 %v1207_v16  ;;  %1090 = vmatprep.mubr.bf16.mxu1 %v1208_v17 }
  0x8b   : > { %1075 = vmatmul.mubr.bf16.gmra.mrb[8].mxu0 %v1209_v18  ;;  %1091 = vmatmul.mubr.bf16.gmra.mrb[8].mxu1 %v1210_v19 }
  0x8c   : > { %1078 = vmatprep.mubr.bf16.mxu0 %v1211_v20  ;;  %1094 = vmatprep.mubr.bf16.mxu1 %v1212_v21 }
  0x93   : > { %1079 = vmatmul.mubr.bf16.gmra.mrb[12].mxu0 %v1213_v22  ;;  %1095 = vmatmul.mubr.bf16.gmra.mrb[12].mxu1 %v1214_v23 }
 0x14e   : > { %v1068_v24 = vpop.f32.mrb[0].mxu0  ;;  %v1084_v25 = vpop.f32.mrb[0].mxu1 }
 0x14f   : > { %v427_v26 = vpop.f32.mrb[1].mxu0  ;;  %v491_v27 = vpop.f32.mrb[1].mxu1 }
 0x150   : > { %v1069_v28 = vpop.f32.mrb[2].mxu0  ;;  %v1085_v29 = vpop.f32.mrb[2].mxu1 }
 0x151   : > { %v939_v30 = vpack.c.bf16 %v1069_v28, %v1068_v24  ;;  %v979_v31 = vpack.c.bf16 %v1085_v29, %v1084_v25  ;;  %v430_v32 = vpop.f32.mrb[3].mxu0  ;;  %v494_v33 = vpop.f32.mrb[3].mxu1 }
 0x152   : > { %v934_v34 = vpack.c.bf16 %v430_v32, %v427_v26  ;;  %v974_v35 = vpack.c.bf16 %v494_v33, %v491_v27 }
 0x153   : > { %1011 = vst [vmem:[%s1575_s17 + $0x8] sm:$0xff] %v939_v30   ;;  %1019 = vst [vmem:[%s1575_s17 + $0x48] sm:$0xff] %v979_v31  }
 0x154   : > { %935 = vst [vmem:[%s1575_s17] sm:$0xff] %v934_v34   ;;  %1018 = vst [vmem:[%s1575_s17 + $0x40] sm:$0xff] %v974_v35  }
 0x156   : > { %v1072_v36 = vpop.f32.mrb[4].mxu0  ;;  %v1088_v37 = vpop.f32.mrb[4].mxu1 }
 0x157   : > { %v443_v38 = vpop.f32.mrb[5].mxu0  ;;  %v507_v39 = vpop.f32.mrb[5].mxu1 }
 0x158   : > { %v1073_v40 = vpop.f32.mrb[6].mxu0  ;;  %v1089_v41 = vpop.f32.mrb[6].mxu1 }
 0x159   : > { %v949_v42 = vpack.c.bf16 %v1073_v40, %v1072_v36  ;;  %v989_v43 = vpack.c.bf16 %v1089_v41, %v1088_v37  ;;  %v446_v44 = vpop.f32.mrb[7].mxu0  ;;  %v510_v45 = vpop.f32.mrb[7].mxu1 }
 0x15a   : > { %v944_v46 = vpack.c.bf16 %v446_v44, %v443_v38  ;;  %v984_v47 = vpack.c.bf16 %v510_v45, %v507_v39 }
 0x15b   : > { %1013 = vst [vmem:[%s1575_s17 + $0x18] sm:$0xff] %v949_v42   ;;  %1021 = vst [vmem:[%s1575_s17 + $0x58] sm:$0xff] %v989_v43  }
 0x15c   : > { %1012 = vst [vmem:[%s1575_s17 + $0x10] sm:$0xff] %v944_v46   ;;  %1020 = vst [vmem:[%s1575_s17 + $0x50] sm:$0xff] %v984_v47  }
 0x15e   : > { %v1076_v48 = vpop.f32.mrb[8].mxu0  ;;  %v1092_v49 = vpop.f32.mrb[8].mxu1 }
 0x15f   : > { %v459_v50 = vpop.f32.mrb[9].mxu0  ;;  %v523_v51 = vpop.f32.mrb[9].mxu1 }
 0x160   : > { %v1077_v52 = vpop.f32.mrb[10].mxu0  ;;  %v1093_v53 = vpop.f32.mrb[10].mxu1 }
 0x161   : > { %v959_v54 = vpack.c.bf16 %v1077_v52, %v1076_v48  ;;  %v999_v55 = vpack.c.bf16 %v1093_v53, %v1092_v49  ;;  %v462_v56 = vpop.f32.mrb[11].mxu0  ;;  %v526_v57 = vpop.f32.mrb[11].mxu1 }
 0x162   : > { %v954_v58 = vpack.c.bf16 %v462_v56, %v459_v50  ;;  %v994_v59 = vpack.c.bf16 %v526_v57, %v523_v51 }
 0x163   : > { %1015 = vst [vmem:[%s1575_s17 + $0x28] sm:$0xff] %v959_v54   ;;  %1023 = vst [vmem:[%s1575_s17 + $0x68] sm:$0xff] %v999_v55  }
 0x164   : > { %1014 = vst [vmem:[%s1575_s17 + $0x20] sm:$0xff] %v954_v58   ;;  %1022 = vst [vmem:[%s1575_s17 + $0x60] sm:$0xff] %v994_v59  }
 0x166   : > { %v1080_v60 = vpop.f32.mrb[12].mxu0  ;;  %v1096_v61 = vpop.f32.mrb[12].mxu1 }
 0x167   : > { %v475_v62 = vpop.f32.mrb[13].mxu0  ;;  %v539_v63 = vpop.f32.mrb[13].mxu1 }
 0x168   : > { %v1081_v0 = vpop.f32.mrb[14].mxu0  ;;  %v1097_v1 = vpop.f32.mrb[14].mxu1 }
 0x169   : > { %v969_v2 = vpack.c.bf16 %v1081_v0, %v1080_v60  ;;  %v1009_v3 = vpack.c.bf16 %v1097_v1, %v1096_v61  ;;  %v478_v4 = vpop.f32.mrb[15].mxu0  ;;  %v542_v5 = vpop.f32.mrb[15].mxu1 }
 0x16a   : > { %v964_v6 = vpack.c.bf16 %v478_v4, %v475_v62  ;;  %v1004_v7 = vpack.c.bf16 %v542_v5, %v539_v63 }
 0x16b   : > { %1017 = vst [vmem:[%s1575_s17 + $0x38] sm:$0xff] %v969_v2   ;;  %1025 = vst [vmem:[%s1575_s17 + $0x78] sm:$0xff] %v1009_v3  }
 0x16c   : > { %1016 = vst [vmem:[%s1575_s17 + $0x30] sm:$0xff] %v964_v6   ;;  %1024 = vst [vmem:[%s1575_s17 + $0x70] sm:$0xff] %v1004_v7  }
 0x16d   : > { %1286 = shalt.err (!%p1283_p5)
}
 0x16e   : > { %s1287_s23 = scalar_lea.hbm %s1594_s4, 2048  ;;  %s1291_s26 = scalar_lea.hbm %s1651_s2, 4096 }
 0x16f   : > { %p1288_p9 = scmp.ne.s32.totalorder %s1594_s4, %s1287_s23  ;;  %p1292_p3 = scmp.lt.u32.totalorder %s1594_s4, %s1651_s2 }
 0x170   : > { %p1293_p7 = scmp.lt.u32.totalorder %s1291_s26, %s1287_s23  ;;  %p1295_p4 = scmp.lt.u32.totalorder %s1287_s23, %s1594_s4 }
 0x171   : > { %p1289_p1 = pnand %p1288_p9, %p1482_p10 }
 0x172   : > { %p1294_p13 = por %p1293_p7, %p1292_p3 }
 0x173   : > { %p1290_p2 = pneg %p1289_p1 }
 0x174   : > { %p1296_p6 = por %p1295_p4, %p1294_p13 }
 0x176   : > { %p1297_p8 = pnand %p1296_p6, %p1290_p2 }
 0x178   : > { %1300 = shalt.err (!%p1297_p8)
}
 0x179   : > { %s1366_s8 = smov 64   ;;  %s1367_s17 = smov 4  }
 0x17a   : > { %1120 = dma.vmem_to_hbm [thread:$0]  (%p1482_p10), %s1596_s21, 2048, %s1594_s4, %s715_s12, %s1366_s8, %s1366_s8, %s1367_s17  }
 0x17b PF: > { %s744_s19 = sand.u32 1, %s1339_s9   ;;  %p1669_p12 = scmp.ne.s32.totalorder %s1659_s20, 0 }
 0x17c   : > { %p1670_p11 = scmp.ge.s32.totalorder %s1359_s14, 2  ;;  %s745_s6 = scalar_lea.sflag [#allocation4], %s744_s19 }
 0x17e   : > { %p1131_p0 = pnand %p1670_p11, %p1669_p12 }
 0x180   : > { %1334 = dma.done.wait (!%p1131_p0), %s745_s6, 2048  }
 0x181   : > { %1336 = vsyncadd (!%p1131_p0), %s745_s6, 4294965248  ;;  %s19_s14 = sadd.s32 1, %s1359_s14   ;;  %s1671_s9 = smov %s1343_s10 }
 0x182   : > { %p16_p5 = scmp.ge.s32.totalorder %s19_s14, 4   ;;  %s1672_s10 = smov %s1347_s11 }
 0x183   : > { %s1673_s11 = smov %s1491_s28  ;;  %s1674_s12 = smov %s1355_s13 }
 0x184   : > { %s1675_s13 = smov %s1677_s25  ;;  %18 = sbr.rel (!%p16_p5) target bundleno = 7 (0x7), region = 78 }
 0x18b   :  { %750 = vsyncpa [#allocation3], 1 }
 0x18c   :  { %752 = vsyncpa [#allocation3 + $0x1], 1 }
 0x18d   :  { %753 = vsyncpa [#allocation6], 1 }
 0x18e   :  { %754 = vsyncpa [#allocation4], 1 }
 0x18f   :  { %756 = vsyncpa [#allocation4 + $0x1], 1 }

</bundles_post_ra>
